<compile_context>
chip_gen: v5e
topology: v5e:2x2
jax: 0.10.0
libtpu: 0.0.40
codegen_flags: <defaults>
</compile_context>

<pallas_src>
import functools

import jax
import jax.numpy as jnp
import numpy as np
from jax.experimental import pallas as pl
from jax.experimental.pallas import tpu as pltpu

DTYPE = jnp.float32


# --------------------------------------------------------------------------
# Fused Self_Attn kernel: QKV projection + energy + softmax + attention @ value
# --------------------------------------------------------------------------

def _self_attn_kernel(x_ref, w_ref, b_ref, out_ref, att_ref, *, e_out):
    """One batch element per grid step.

    x_ref:   [1, 1, E_in]          f32
    w_ref:   [E_in, 3*E_out]       bf16  (Wq | Wk | Wv fused, stored input-major)
    b_ref:   [1, 3*E_out]          f32
    out_ref: [1, 1, E_out]         f32
    att_ref: [1, E_out, E_out]     f32
    """
    x = x_ref[0]                                                  # [1, E_in]

    # Fused Q/K/V projection: bf16 operands on the MXU, f32 accumulate + bias.
    qkv = jnp.dot(x.astype(jnp.bfloat16), w_ref[...],
                  preferred_element_type=jnp.float32) + b_ref[...]   # [1, 3E]
    q = qkv[:, 0:e_out]                                           # [1, E]
    k = qkv[:, e_out:2 * e_out]                                   # [1, E]
    v = qkv[:, 2 * e_out:3 * e_out]                               # [1, E]

    # energy[0, i, j] = q[0, i] * k[0, j]   (outer product; single-tile at E=16)
    energy = q[:, :, None] * k[:, None, :]                        # [1, E, E]

    # Numerically-stable softmax over the key axis (last dim), matching nn.Softmax(-1).
    m = jnp.max(energy, axis=-1, keepdims=True)
    p = jnp.exp(energy - m)
    att = p / jnp.sum(p, axis=-1, keepdims=True)                  # [1, E, E]

    # out[0, i] = sum_j att[0, i, j] * v[0, j]
    #   == (proj_value @ attention.permute(0,2,1)) in the PyTorch reference.
    out = jnp.sum(att * v[:, None, :], axis=-1)                   # [1, E]

    out_ref[0] = out.astype(out_ref.dtype)
    att_ref[...] = att.astype(att_ref.dtype)


def pallas_self_attn(x, w_qkv, b_qkv, e_out):
    """x: [B, E_in] -> (out [B, E_out], attention [B, E_out, E_out])."""
    B, e_in = x.shape
    x3 = x.reshape(B, 1, e_in)                 # mirrors torch's x.unsqueeze(1)

    out3, att = pl.pallas_call(
        functools.partial(_self_attn_kernel, e_out=e_out),
        out_shape=(
            jax.ShapeDtypeStruct((B, 1, e_out), DTYPE),
            jax.ShapeDtypeStruct((B, e_out, e_out), DTYPE),
        ),
        grid=(B,),
        in_specs=[
            pl.BlockSpec((1, 1, e_in), lambda b: (b, 0, 0)),
            pl.BlockSpec((e_in, 3 * e_out), lambda b: (0, 0)),
            pl.BlockSpec((1, 3 * e_out), lambda b: (0, 0)),
        ],
        out_specs=(
            pl.BlockSpec((1, 1, e_out), lambda b: (b, 0, 0)),
            pl.BlockSpec((1, e_out, e_out), lambda b: (b, 0, 0)),
        ),
        # No vmem_limit_bytes: default scoped VMEM is ample and stays valid on v7x
        # (64 MiB physical). "parallel" lets v7x shard batches across its 2 TCs.
        compiler_params=pltpu.CompilerParams(
            dimension_semantics=("parallel",)),
    )(x3, w_qkv, b_qkv.reshape(1, 3 * e_out))

    return out3.reshape(B, e_out), att


# --------------------------------------------------------------------------
# Parameter init (LinearNorm: xavier_uniform weight, gain('linear')=1;
# torch.nn.Linear default bias init)
# --------------------------------------------------------------------------

def init_self_attn_params(key, e_in, e_out):
    ks = jax.random.split(key, 6)
    bound_w = (6.0 / (e_in + e_out)) ** 0.5
    bound_b = 1.0 / (e_in ** 0.5)

    def w(k):
        return jax.random.uniform(k, (e_in, e_out), DTYPE, -bound_w, bound_w)

    def b(k):
        return jax.random.uniform(k, (e_out,), DTYPE, -bound_b, bound_b)

    wq, wk, wv = w(ks[0]), w(ks[1]), w(ks[2])
    bq, bk, bv = b(ks[3]), b(ks[4]), b(ks[5])

    # Fuse the three projections for a single MXU matmul; store the weight in bf16
    # (MXU-native on v6e/v7x, halves HBM/VMEM traffic).
    w_qkv = jnp.concatenate([wq, wk, wv], axis=1).astype(jnp.bfloat16)
    b_qkv = jnp.concatenate([bq, bk, bv], axis=0)
    return w_qkv, b_qkv


# --------------------------------------------------------------------------
# Pure-JAX f32 reference of the PyTorch forward (for a correctness check)
# --------------------------------------------------------------------------

def self_attn_reference(x, w_qkv, b_qkv, e_out):
    qkv = x.astype(jnp.float32) @ w_qkv.astype(jnp.float32) + b_qkv[None, :]
    q = qkv[:, 0:e_out]
    k = qkv[:, e_out:2 * e_out]
    v = qkv[:, 2 * e_out:3 * e_out]
    energy = q[:, :, None] * k[:, None, :]                 # [B, E, E]
    att = jax.nn.softmax(energy, axis=-1)
    out = jnp.einsum("bij,bj->bi", att, v)                 # v applied with att (i <- j)
    return out, att


# --------------------------------------------------------------------------
if __name__ == "__main__":
    B, dim_emb_in, dim_emb_out = 2, 16, 16

    key = jax.random.PRNGKey(0)
    kp, kx = jax.random.split(key)
    w_qkv, b_qkv = init_self_attn_params(kp, dim_emb_in, dim_emb_out)
    x = jax.random.normal(kx, (B, dim_emb_in), DTYPE)

    out, att = pallas_self_attn(x, w_qkv, b_qkv, dim_emb_out)
    jax.block_until_ready((out, att))

    assert out.shape == (B, dim_emb_out)
    assert att.shape == (B, dim_emb_out, dim_emb_out)

    ref_out, ref_att = self_attn_reference(x, w_qkv, b_qkv, dim_emb_out)
    # Loose tolerance: the kernel feeds the projection MXU with bf16 operands.
    np.testing.assert_allclose(np.asarray(att), np.asarray(ref_att), atol=2e-2, rtol=2e-2)
    np.testing.assert_allclose(np.asarray(out), np.asarray(ref_out), atol=2e-2, rtol=2e-2)
    np.testing.assert_allclose(np.asarray(att).sum(-1), 1.0, atol=1e-5, rtol=1e-5)

    print("KERNEL_OK")
</pallas_src>

<mosaic_0001>
module attributes {stable_mosaic.version = 11 : i64} {
  func.func @_self_attn_kernel(%arg0: i32, %arg1: memref<1x1x16xf32, #tpu.memory_space<vmem>>, %arg2: memref<16x48xbf16, #tpu.memory_space<vmem>>, %arg3: memref<1x48xf32, #tpu.memory_space<vmem>>, %arg4: memref<1x1x16xf32, #tpu.memory_space<vmem>>, %arg5: memref<1x16x16xf32, #tpu.memory_space<vmem>>) attributes {dimension_semantics = [#tpu.dimension_semantics<parallel>], iteration_bounds = array<i64: 2>, scalar_prefetch = 0 : i64, scratch_operands = 0 : i64, tpu.core_type = #tpu.core_type<tc>, window_params = [{transform_indices = @transform_0, window_bounds = array<i64: 1, 1, 16>}, {pipeline_mode = #tpu.pipeline_mode<synchronous>, transform_indices = @transform_1, window_bounds = array<i64: 16, 48>}, {pipeline_mode = #tpu.pipeline_mode<synchronous>, transform_indices = @transform_2, window_bounds = array<i64: 1, 48>}, {transform_indices = @transform_3, window_bounds = array<i64: 1, 1, 16>}, {transform_indices = @transform_4, window_bounds = array<i64: 1, 16, 16>}]} {
    %c0 = arith.constant 0 : index
    %c0_0 = arith.constant 0 : index
    %c0_1 = arith.constant 0 : index
    %0 = vector.load %arg1[%c0, %c0_0, %c0_1] : memref<1x1x16xf32, #tpu.memory_space<vmem>>, vector<1x1x16xf32>
    %1 = vector.shape_cast %0 : vector<1x1x16xf32> to vector<1x16xf32>
    %2 = arith.truncf %1 : vector<1x16xf32> to vector<1x16xbf16>
    %c0_2 = arith.constant 0 : index
    %c0_3 = arith.constant 0 : index
    %3 = vector.load %arg2[%c0_2, %c0_3] : memref<16x48xbf16, #tpu.memory_space<vmem>>, vector<16x48xbf16>
    %cst = arith.constant dense<0.000000e+00> : vector<1x48xf32>
    %4 = tpu.matmul %2, %3, %cst {dimension_numbers = #tpu.dot_dimension_numbers<[1], [0], [0], [1], [0, 0, 1, 1], [], []>} : vector<1x16xbf16>, vector<16x48xbf16>, vector<1x48xf32> -> vector<1x48xf32>
    %c0_4 = arith.constant 0 : index
    %c0_5 = arith.constant 0 : index
    %5 = vector.load %arg3[%c0_4, %c0_5] : memref<1x48xf32, #tpu.memory_space<vmem>>, vector<1x48xf32>
    %6 = arith.addf %4, %5 : vector<1x48xf32>
    %7 = vector.extract_strided_slice %6 {offsets = [0, 0], sizes = [1, 16], strides = [1, 1]} : vector<1x48xf32> to vector<1x16xf32>
    %8 = vector.extract_strided_slice %6 {offsets = [0, 16], sizes = [1, 16], strides = [1, 1]} : vector<1x48xf32> to vector<1x16xf32>
    %9 = vector.extract_strided_slice %6 {offsets = [0, 32], sizes = [1, 16], strides = [1, 1]} : vector<1x48xf32> to vector<1x16xf32>
    %10 = vector.shape_cast %7 : vector<1x16xf32> to vector<1x16x1xf32>
    %11 = vector.shape_cast %8 : vector<1x16xf32> to vector<1x1x16xf32>
    %12 = vector.broadcast %10 : vector<1x16x1xf32> to vector<1x16x16xf32>
    %13 = vector.broadcast %11 : vector<1x1x16xf32> to vector<1x16x16xf32>
    %14 = arith.mulf %12, %13 : vector<1x16x16xf32>
    %cst_6 = arith.constant dense<0xFF800000> : vector<1x16xf32>
    %15 = vector.multi_reduction <maximumf>, %14, %cst_6 [2] : vector<1x16x16xf32> to vector<1x16xf32>
    %16 = vector.shape_cast %15 : vector<1x16xf32> to vector<1x16x1xf32>
    %17 = vector.broadcast %16 : vector<1x16x1xf32> to vector<1x16x16xf32>
    %18 = arith.subf %14, %17 : vector<1x16x16xf32>
    %19 = math.exp %18 : vector<1x16x16xf32>
    %cst_7 = arith.constant dense<0.000000e+00> : vector<1x16xf32>
    %20 = vector.multi_reduction <add>, %19, %cst_7 [2] : vector<1x16x16xf32> to vector<1x16xf32>
    %21 = vector.shape_cast %20 : vector<1x16xf32> to vector<1x16x1xf32>
    %22 = vector.broadcast %21 : vector<1x16x1xf32> to vector<1x16x16xf32>
    %23 = arith.divf %19, %22 : vector<1x16x16xf32>
    %24 = vector.shape_cast %9 : vector<1x16xf32> to vector<1x1x16xf32>
    %25 = vector.broadcast %24 : vector<1x1x16xf32> to vector<1x16x16xf32>
    %26 = arith.mulf %23, %25 : vector<1x16x16xf32>
    %cst_8 = arith.constant dense<0.000000e+00> : vector<1x16xf32>
    %27 = vector.multi_reduction <add>, %26, %cst_8 [2] : vector<1x16x16xf32> to vector<1x16xf32>
    %c0_9 = arith.constant 0 : index
    %c0_10 = arith.constant 0 : index
    %c0_11 = arith.constant 0 : index
    %28 = vector.load %arg4[%c0_9, %c0_10, %c0_11] : memref<1x1x16xf32, #tpu.memory_space<vmem>>, vector<1x1x16xf32>
    %29 = vector.shape_cast %28 : vector<1x1x16xf32> to vector<1x16xf32>
    %30 = vector.shape_cast %27 : vector<1x16xf32> to vector<1x1x16xf32>
    tpu.vector_store %arg4[%c0_9, %c0_10, %c0_11], %30 {strides = array<i32>} : memref<1x1x16xf32, #tpu.memory_space<vmem>>, vector<1x1x16xf32>,
    %c0_12 = arith.constant 0 : index
    %c0_13 = arith.constant 0 : index
    %c0_14 = arith.constant 0 : index
    %31 = vector.load %arg5[%c0_12, %c0_13, %c0_14] : memref<1x16x16xf32, #tpu.memory_space<vmem>>, vector<1x16x16xf32>
    tpu.vector_store %arg5[%c0_12, %c0_13, %c0_14], %23 {strides = array<i32>} : memref<1x16x16xf32, #tpu.memory_space<vmem>>, vector<1x16x16xf32>,
    return
  }
  func.func @transform_0(%arg0: i32) -> (i32, i32, i32) {
    %c0_i32 = arith.constant 0 : i32
    %c0_i32_0 = arith.constant 0 : i32
    %c0_i32_1 = arith.constant 0 : i32
    return %arg0, %c0_i32, %c0_i32_0 : i32, i32, i32
  }
  func.func @transform_1(%arg0: i32) -> (i32, i32) {
    %c0_i32 = arith.constant 0 : i32
    %c0_i32_0 = arith.constant 0 : i32
    %c0_i32_1 = arith.constant 0 : i32
    return %c0_i32, %c0_i32_0 : i32, i32
  }
  func.func @transform_2(%arg0: i32) -> (i32, i32) {
    %c0_i32 = arith.constant 0 : i32
    %c0_i32_0 = arith.constant 0 : i32
    %c0_i32_1 = arith.constant 0 : i32
    return %c0_i32, %c0_i32_0 : i32, i32
  }
  func.func @transform_3(%arg0: i32) -> (i32, i32, i32) {
    %c0_i32 = arith.constant 0 : i32
    %c0_i32_0 = arith.constant 0 : i32
    %c0_i32_1 = arith.constant 0 : i32
    return %arg0, %c0_i32, %c0_i32_0 : i32, i32, i32
  }
  func.func @transform_4(%arg0: i32) -> (i32, i32, i32) {
    %c0_i32 = arith.constant 0 : i32
    %c0_i32_0 = arith.constant 0 : i32
    %c0_i32_1 = arith.constant 0 : i32
    return %arg0, %c0_i32, %c0_i32_0 : i32, i32, i32
  }
}

</mosaic_0001>

<bundles_post_ra>
// kernel: tpu_custom_call.1
= control target key start
LH: loop header
LB: loop body
LE: loop exit
PB: predicated region body
PF: predicated region fallthrough
CT: control target
= control target key end

     0   :  { %10 = vsyncpa [#allocation3], 0  ;;  %s984_s0 = inlined_call_operand.hbm [shape: f32[2,1,16], index: 0, kind: input, shape index: {}]   ;;  %s985_s1 = inlined_call_operand.hbm [shape: bf16[16,48], index: 1, kind: input, shape index: {}]   ;;  %s986_s2 = inlined_call_operand.vmem [shape: f32[1,48], index: 2, kind: input, shape index: {}]   ;;  %s987_s3 = inlined_call_operand.hbm [shape: f32[2,1,16], index: 3, kind: output, shape index: {0}]   ;;  %s988_s4 = inlined_call_operand.hbm [shape: f32[2,16,16], index: 4, kind: output, shape index: {1}]  }
   0x1   :  { %12 = vsyncpa [#allocation3 + $0x1], 0 }
   0x2   :  { %13 = vsyncpa [#allocation6], 0 }
   0x3   :  { %14 = vsyncpa [#allocation4], 0 }
   0x4   :  { %16 = vsyncpa [#allocation4 + $0x1], 0 }
   0x5   :  { %17 = vsyncpa [#allocation9], 0 }
   0x6   :  { %19 = vsyncpa [#allocation9 + $0x1], 0  ;;  %s812_s15 = smov 0   ;;  %s814_s16 = smov 0  }
   0x7   :  { %s816_s17 = smov 0   ;;  %s818_s18 = smov 0  }
   0x8 LB: > { %s161_s21 = sshll.u32 %s985_s1, 4  ;;  %s836_s22 = sadd.s32 4294967295, %s779_s18   ;;  %s779_s18 = sphi %s818_s18, %s998_s18   ;;  %s775_s17 = sphi %s816_s17, %s997_s17   ;;  %s771_s16 = sphi %s814_s16, %s996_s16   ;;  %s767_s15 = sphi %s812_s15, %s995_s15   ;;  %s162_s21 = int_to_ptr.hbm [resolvable:$true] %s161_s21 }
   0x9   : > { %p522_p0 = scmp.ge.s32.totalorder %s779_s18, 1  ;;  %p46_p1 = scmp.eq.s32.totalorder %s836_s22, 0 }
   0xa   : > { %p150_p2 = scmp.lt.s32.totalorder %s779_s18, 3  ;;  %s781_s24 = smov [#allocation5]  }
   0xb   : > { %s163_s25 = sshll.u32 %s781_s24, 4  ;;  %s782_s26 = smov 64   ;;  %s164_s25 = int_to_ptr.vmem [resolvable:$true] %s163_s25 }
   0xc   : > { %p841_p3 = pnand %p522_p0, %p150_p2  ;;  %s783_s27 = smov 4  }
   0xd   : > { %s521_s28 = sadd.s32 4294967294, %s779_s18   ;;  %s852_s29 = sadd.s32 1, %s779_s18  }
   0xe   : > { %p550_p4 = pneg %p841_p3  ;;  %s32_s30 = sadd.s32 1, %s775_s17 }
   0xf   : > { %s29_s5 = ssub.s32 %s779_s18, %s852_s29  ;;  %p39_p7 = scmp.ne.s32.totalorder %s775_s17, %s771_s16 }
  0x10   : > { %p551_p6 = pnand %p550_p4, %p46_p1  ;;  %p30_p8 = scmp.eq.s32.totalorder %s29_s5, 0 }
  0x11   : > { %p40_p9 = scmp.eq.s32.totalorder %s779_s18, 0  ;;  %p45_p10 = scmp.ne.s32.totalorder %s771_s16, %s767_s15 }
  0x12   : > { %553 = dma.hbm_to_vmem [thread:$0]  (!%p551_p6), %s162_s21, 128, %s164_s25, [#allocation6], %s782_s26, %s782_s26, %s783_s27  }
  0x13   : > { %p111_p11 = scmp.eq.s32.totalorder %s836_s22, 1  ;;  %p868_p12 = por %p46_p1, %p45_p10 }
  0x14   : > { %s864_s6 = scalar_select %p30_p8, %s775_s17, %s32_s30  }
  0x15   : > { %p872_p13 = por %p111_p11, %p39_p7  ;;  %p117_p0 = scmp.eq.s32.totalorder %s521_s28, 1 }
  0x16   : > { %p41_p2 = por %p40_p9, %p39_p7  ;;  %s180_s9 = sand.u32 1, %s775_s17  }
  0x17   : > { %p877_p4 = por %p117_p0, %p45_p10  ;;  %p566_p6 = scmp.lt.s32.totalorder %s779_s18, 2 }
  0x18   : > { %s186_s13 = scalar_lea.hbm %s984_s0, %s779_s18  ;;  %s183_s19 = scalar_lea.vmem [#allocation2], %s180_s9 }
  0x19   : > { %s188_s14 = sshll.u32 %s186_s13, 4  ;;  %s190_s20 = sshll.u32 %s183_s19, 4  ;;  %s189_s14 = int_to_ptr.hbm [resolvable:$true] %s188_s14  ;;  %s191_s20 = int_to_ptr.vmem [resolvable:$true] %s190_s20 }
  0x1a   : > { %p886_p8 = pnand %p566_p6, %p41_p2  ;;  %s181_s24 = scalar_lea.sflag [#allocation3], %s180_s9 }
  0x1b   : > { %s647_s25 = sshra.s32 %s189_s14, 4  ;;  %s654_s30 = scalar_lea.hbm %s984_s0, 2  ;;  %s648_s25 = int_to_ptr.hbm [resolvable:$true] %s647_s25 }
  0x1c   : > { %s649_s26 = scalar_lea.hbm %s648_s25, 1  ;;  %p651_p9 = pneg %p886_p8 }
  0x1d   : > { %p650_p7 = scmp.ne.s32.totalorder %s648_s25, %s649_s26  ;;  %p655_p0 = scmp.lt.s32.totalorder %s648_s25, %s984_s0 }
  0x1e   : > { %p656_p2 = scmp.lt.s32.totalorder %s654_s30, %s649_s26 }
  0x1f   : > { %p652_p10 = pnand %p651_p9, %p650_p7 }
  0x20   : > { %p657_p6 = por %p656_p2, %p655_p0 }
  0x21   : > { %p653_p11 = pneg %p652_p10 }
  0x23   : > { %p658_p5 = pnand %p657_p6, %p653_p11 }
  0x25   : > { %661 = shalt.err (!%p658_p5)
}
  0x26   : > { %557 = dma.hbm_to_vmem [thread:$0]  (!%p886_p8), %s189_s14, 16, %s191_s20, %s181_s24  }
  0x27   : > { %199 = sbr.rel (%p841_p3) target bundleno = 909 (0x38d), region = 32  ;;  %s903_s9 = sand.u32 (!%p841_p3), 1, %s771_s16  }
  0x28   : > { %s202_s12 = scalar_lea.sflag (!%p841_p3), [#allocation3], %s903_s9  ;;  %s204_s13 = scalar_lea.vmem (!%p841_p3), [#allocation2], %s903_s9 }
  0x2c   : > { %750 = dma.done.wait (%p868_p12), %s202_s12, 16  }
  0x2d   : > { %752 = vsyncadd (%p868_p12), %s202_s12, 4294967280 }
  0x2e   : > { %754 = dma.done.wait (%p46_p1), [#allocation6], 128  }
  0x2f   : > { %756 = vsyncadd (%p46_p1), [#allocation6], 4294967168  ;;  %v268_v0 = vlaneseq  ;;  %v538_v2 = vld [vmem:[#allocation5] sm:$0xff]  ;;  %v239_v3 = vld [vmem:[%s204_s13] sm:$0x1]  ;;  %vm250_vm0 = vcmask 130048  }
  0x30   : > { %v240_v4 = vpack.c.bf16 %v239_v3, %v239_v3  ;;  %261 = vmatpush.bf16.msra.mxu0 %v538_v2  ;;  %v243_v5 = vld [vmem:[%s986_s2] sm:$0x1]  ;;  %s784_s14 = smov 112   ;;  %vm282_vm1 = vcmask 261248   ;;  %s527_s19 = sshll.u32 %s903_s9, 4 }
  0x31   : > { %v269_v1 = vshrl.u32 %v268_v0, 7  ;;  %s237_s20 = scalar_lea.vmem [#allocation8], %s527_s19  ;;  %s539_s24 = sshll.u32 %s836_s22, 4 }
  0x32   : > { %s411_s21 = sshll.u32 %s237_s20, 4  ;;  %s410_s27 = scalar_lea.hbm %s988_s4, %s539_s24  ;;  %s412_s21 = int_to_ptr.vmem [resolvable:$true] %s411_s21 }
  0x33   : > { %607 = vset.pattern.permute.xlu0 %v269_v1  ;;  %532 = vmatmul.msk.bf16.vlgmr.msra.gmra.mxu0 %vm250_vm0, %v240_v4  ;;  %v276_v10 = vadd.s32 8, %v269_v1  ;;  %s413_s28 = sshll.u32 %s410_s27, 4  ;;  %s386_s30 = scalar_lea.sflag [#allocation9], %s903_s9  ;;  %s414_s28 = int_to_ptr.hbm [resolvable:$true] %s413_s28 }
  0x34   : > { %s691_s5 = sshra.s32 %s414_s28, 4  ;;  %s697_s23 = scalar_lea.hbm %s988_s4, 32  ;;  %s692_s5 = int_to_ptr.hbm [resolvable:$true] %s691_s5 }
  0x35   : > { %s693_s11 = scalar_lea.hbm %s692_s5, 16  ;;  %p698_p12 = scmp.lt.s32.totalorder %s692_s5, %s988_s4 }
  0x36   : > { %p694_p1 = scmp.ne.s32.totalorder %s692_s5, %s693_s11  ;;  %p699_p8 = scmp.lt.s32.totalorder %s697_s23, %s693_s11 }
  0x38   : > { %p695_p3 = pnand %p694_p1, %p872_p13  ;;  %p700_p7 = por %p699_p8, %p698_p12 }
  0x3a   : > { %p696_p5 = pneg %p695_p3 }
  0x3c   : > { %p701_p9 = pnand %p700_p7, %p696_p5 }
  0xb0   : > { %v263_v6 = vpop.f32.mrf.mxu0 }
  0xb1   : > { %v264_v7 = vadd.f32 %v263_v6, %v243_v5 }
  0xb3   : > { %v267_v8 = vperm.slane %v264_v7, 0 }
  0xb5   : > { %272 = vperm.xlu0 %607, %v267_v8  }
  0xb8   : > { %v265_v9 = vpop.f32.mrf.mxu0 }
  0xbd   : > { %608 = vset.pattern.permute.xlu0 %v276_v10 }
  0xc5   : > { %278 = vperm.xlu0 %608, %v267_v8  }
  0xcd   : > { %340 = vrot.lane.b32.xlu0 %v267_v8, %s784_s14 }
 0x127   : > { %v273_v11 = vpop.permute.xlu0 %272 }
 0x128   : > { %v280_v12 = vmul.f32 %v273_v11, %v267_v8 }
 0x12a   : > { %v283_v13 = vsel %vm282_vm1, %v280_v12, -inf }
 0x12b   : > { %284 = vmax.xlane.f32.xlu1 %v283_v13 }
 0x137   : > { %v279_v14 = vpop.permute.xlu0 %278 }
 0x138   : > { %v281_v15 = vmul.f32 %v279_v14, %v267_v8 }
 0x13a   : > { %v286_v16 = vsel %vm282_vm1, %v281_v15, -inf }
 0x13b   : > { %287 = vmax.xlane.f32.xlu1 %v286_v16 }
 0x13f   : > { %v341_v42 = vpop.permute.xlu0 %340 }
 0x19e   : > { %v285_v17 = vpop.xlane.xlu1 %284 }
 0x19f   : > { %v289_v18 = vsub.f32 %v280_v12, %v285_v17 }
 0x1a1   : > { %v291_v19 = vmul.f32 1.442695, %v289_v18 }
 0x1a3   : > { %609 = vpow2.f32 %v291_v19 }
 0x1a9   : > { %v610_v20 = vpop.eup %609 }
 0x1aa   : > { %297 = vrot.lane.b32.xlu2 %v610_v20, %s784_s14 }
 0x1ae   : > { %v288_v21 = vpop.xlane.xlu1 %287 }
 0x1af   : > { %v290_v22 = vsub.f32 %v281_v15, %v288_v21 }
 0x1b1   : > { %v293_v23 = vmul.f32 1.442695, %v290_v22 }
 0x1b3   : > { %611 = vpow2.f32 %v293_v23 }
 0x1b9   : > { %v612_v24 = vpop.eup %611 }
 0x1ba   : > { %299 = vrot.lane.b32.xlu2 %v612_v24, %s784_s14 }
 0x204   : > { %v298_v25 = vpop.permute.xlu2 %297 }
 0x205   : > { %v303_v26 = vsel %vm250_vm0, %v298_v25, 0.0 }
 0x206   : > { %304 = vadd.xlane.f32.xlu1 %v303_v26 }
 0x214   : > { %v300_v27 = vpop.permute.xlu2 %299 }
 0x215   : > { %v306_v28 = vsel %vm250_vm0, %v300_v27, 0.0 }
 0x216   : > { %307 = vadd.xlane.f32.xlu2 %v306_v28 }
 0x279   : > { %v305_v29 = vpop.xlane.xlu1 %304 }
 0x27a   : > { %613 = vrcp.f32 %v305_v29  ;;  %v320_v33 = vand.u32 2147483648, %v305_v29  ;;  %v318_v35 = vand.u32 2147483647, %v305_v29  ;;  %vm314_vm3 = vweird.f32 %v305_v29 }
 0x27c   : > { %v321_v37 = vor.u32 1.1754944e-38, %v320_v33  ;;  %vm319_vm5 = vcmp.eq.f32.partialorder %v318_v35, 8.507059e+37 }
 0x280   : > { %v614_v30 = vpop.eup %613 }
 0x281   : > { %v310_v31 = vmul.f32 %v614_v30, %v305_v29  ;;  %vm315_vm2 = vweird.f32 %v614_v30 }
 0x282   : > { %vm316_vm4 = vmor %vm314_vm3, %vm315_vm2 }
 0x283   : > { %v311_v32 = vsub.f32 1.0, %v310_v31 }
 0x285   : > { %v312_v34 = vmul.f32 %v614_v30, %v311_v32 }
 0x287   : > { %v313_v36 = vadd.f32 %v614_v30, %v312_v34 }
 0x289   : > { %v308_v38 = vpop.xlane.xlu2 %307  ;;  %v317_v39 = vsel %vm316_vm4, %v614_v30, %v313_v36 }
 0x28a   : > { %615 = vrcp.f32 %v308_v38  ;;  %v322_v40 = vsel %vm319_vm5, %v321_v37, %v317_v39  ;;  %v335_v47 = vand.u32 2147483648, %v308_v38  ;;  %v333_v49 = vand.u32 2147483647, %v308_v38 }
 0x28b   : > { %v323_v41 = vmul.f32 %v610_v20, %v322_v40  ;;  %vm329_vm7 = vweird.f32 %v308_v38 }
 0x28c   : > { %v336_v51 = vor.u32 1.1754944e-38, %v335_v47  ;;  %vm334_vm9 = vcmp.eq.f32.partialorder %v333_v49, 8.507059e+37 }
 0x28d   : > { %373 = vrot.lane.b32.xlu2 %v323_v41, %s784_s14  ;;  %v343_v43 = vmul.f32 %v341_v42, %v323_v41 }
 0x28f   : > { %347 = vrot.lane.b32.xlu1 %v343_v43, %s784_s14 }
 0x290   : > { %v616_v44 = vpop.eup %615 }
 0x291   : > { %v325_v45 = vmul.f32 %v616_v44, %v308_v38  ;;  %vm330_vm6 = vweird.f32 %v616_v44 }
 0x292   : > { %vm331_vm8 = vmor %vm329_vm7, %vm330_vm6 }
 0x293   : > { %v326_v46 = vsub.f32 1.0, %v325_v45 }
 0x295   : > { %v327_v48 = vmul.f32 %v616_v44, %v326_v46 }
 0x297   : > { %v328_v50 = vadd.f32 %v616_v44, %v327_v48 }
 0x299   : > { %v332_v52 = vsel %vm331_vm8, %v616_v44, %v328_v50 }
 0x29a   : > { %v337_v53 = vsel %vm334_vm9, %v336_v51, %v332_v52 }
 0x29b   : > { %v338_v54 = vmul.f32 %v612_v24, %v337_v53 }
 0x29d   : > { %375 = vrot.lane.b32.xlu2 %v338_v54, %s784_s14  ;;  %v344_v55 = vmul.f32 %v341_v42, %v338_v54 }
 0x29f   : > { %349 = vrot.lane.b32.xlu0 %v344_v55, %s784_s14 }
 0x2e7   : > { %v374_v56 = vpop.permute.xlu2 %373 }
 0x2e8   : > { %379 = vst.msk [vmem:[%s237_s20] sm:$0xff] %vm250_vm0, %v374_v56 }
 0x2f7   : > { %v376_v57 = vpop.permute.xlu2 %375 }
 0x2f8   : > { %380 = vst.msk [vmem:[%s237_s20 + $0x8] sm:$0xff] %vm250_vm0, %v376_v57 }
 0x301   : > { %v348_v58 = vpop.permute.xlu1 %347 }
 0x302   : > { %v353_v59 = vsel %vm250_vm0, %v348_v58, 0.0 }
 0x303   : > { %354 = vadd.xlane.f32.xlu0 %v353_v59 }
 0x304   : > { %704 = shalt.err (!%p701_p9)
}
 0x305   : > { %s785_s19 = smov 128   ;;  %s786_s20 = smov 8   ;;  %v362_v62 = vand.u32 127, %v268_v0  ;;  %vm366_vm10 = vcmask 130112   ;;  %vm369_vm11 = vcmask 122880  }
 0x306   : > { %547 = dma.vmem_to_hbm [thread:$0]  (%p872_p13), %s412_s21, 256, %s414_s28, %s386_s30, %s785_s19, %s785_s19, %s786_s20  }
 0x307   : > { %s395_s26 = scalar_lea.hbm %s987_s3, %s836_s22  ;;  %v364_v63 = vadd.s32 4294967288, %v362_v62  ;;  %s230_s27 = scalar_lea.vmem [#allocation7], %s903_s9 }
 0x308   : > { %s397_s5 = sshll.u32 %s230_s27, 4  ;;  %s399_s11 = sshll.u32 %s395_s26, 4  ;;  %s398_s5 = int_to_ptr.vmem [resolvable:$true] %s397_s5  ;;  %s400_s11 = int_to_ptr.hbm [resolvable:$true] %s399_s11 }
 0x309   : > { %s382_s21 = scalar_lea.sflag [#allocation4], %s903_s9  ;;  %s719_s28 = sshra.s32 %s400_s11, 4  ;;  %s720_s28 = int_to_ptr.hbm [resolvable:$true] %s719_s28 }
 0x30a   : > { %s721_s30 = scalar_lea.hbm %s720_s28, 1  ;;  %s725_s13 = scalar_lea.hbm %s987_s3, 2 }
 0x30b   : > { %p722_p10 = scmp.ne.s32.totalorder %s720_s28, %s721_s30  ;;  %p726_p2 = scmp.lt.s32.totalorder %s720_s28, %s987_s3 }
 0x30c   : > { %p727_p6 = scmp.lt.s32.totalorder %s725_s13, %s721_s30 }
 0x30d   : > { %p723_p11 = pnand %p722_p10, %p872_p13 }
 0x30e   : > { %p728_p1 = por %p727_p6, %p726_p2 }
 0x30f   : > { %p724_p0 = pneg %p723_p11 }
 0x311   : > { %v350_v60 = vpop.permute.xlu0 %349  ;;  %p729_p3 = pnand %p728_p1, %p724_p0 }
 0x312   : > { %v356_v61 = vsel %vm250_vm0, %v350_v60, 0.0 }
 0x313   : > { %357 = vadd.xlane.f32.xlu1 %v356_v61 }
 0x376   : > { %v355_v1 = vpop.xlane.xlu0 %354 }
 0x377   : > { %v363_v3 = vperm.slane %v355_v1, %v362_v62 }
 0x386   : > { %v358_v2 = vpop.xlane.xlu1 %357 }
 0x387   : > { %v365_v4 = vperm.slane %v358_v2, %v364_v63 }
 0x389   : > { %v367_v5 = vsel %vm366_vm10, %v365_v4, %v363_v3 }
 0x38a   : > { %370 = vst.msk [vmem:[%s230_s27] sm:$0x1] %vm369_vm11, %v367_v5 }
 0x38b   : > { %732 = shalt.err (!%p729_p3)
}
 0x38c   : > { %546 = dma.vmem_to_hbm [thread:$0]  (%p872_p13), %s398_s5, 16, %s400_s11, %s382_s21  }
 0x38d PF: > { %s428_s9 = sand.u32 1, %s767_s15   ;;  %p994_p5 = scmp.ge.s32.totalorder %s779_s18, 2 }
 0x38e   : > { %s429_s14 = scalar_lea.sflag [#allocation4], %s428_s9 }
 0x38f   : > { %p559_p12 = pnand %p994_p5, %p877_p4 }
 0x391   : > { %p560_p8 = pneg %p559_p12 }
 0x393   : > { %758 = dma.done.wait (%p560_p8), %s429_s14, 16  }
 0x394   : > { %760 = vsyncadd (%p560_p8), %s429_s14, 4294967280  ;;  %s438_s19 = scalar_lea.sflag [#allocation9], %s428_s9 }
 0x395   : > { %762 = dma.done.wait (%p560_p8), %s438_s19, 256  }
 0x396   : > { %764 = vsyncadd (%p560_p8), %s438_s19, 4294967040  ;;  %p22_p13 = scmp.ge.s32.totalorder %s852_s29, 4   ;;  %s995_s15 = smov %s771_s16 }
 0x397   : > { %s996_s16 = smov %s775_s17  ;;  %s997_s17 = smov %s864_s6 }
 0x398   : > { %s998_s18 = smov %s852_s29  ;;  %24 = sbr.rel (!%p22_p13) target bundleno = 8 (0x8), region = 98 }
 0x39d   :  { %444 = vsyncpa [#allocation3], 1 }
 0x39e   :  { %446 = vsyncpa [#allocation3 + $0x1], 1 }
 0x39f   :  { %447 = vsyncpa [#allocation6], 1 }
 0x3a0   :  { %448 = vsyncpa [#allocation4], 1 }
 0x3a1   :  { %450 = vsyncpa [#allocation4 + $0x1], 1 }
 0x3a2   :  { %451 = vsyncpa [#allocation9], 1 }
 0x3a3   :  { %453 = vsyncpa [#allocation9 + $0x1], 1 }

</bundles_post_ra>
